<compile_context>
chip_gen: v7x
topology: tpu7x:2x2x1
jax: 0.10.0
libtpu: 0.0.40
codegen_flags: <defaults>
</compile_context>

<pallas_src>
import functools
import math

import jax
import jax.numpy as jnp
from jax.experimental import pallas as pl
from jax.experimental.pallas import tpu as pltpu


def _round_up(x, m):
    return ((x + m - 1) // m) * m


def _choose_batch_tiling(batch):
    """Pick (batch tile, padded batch) minimizing pad waste + per-step overhead."""
    best = None
    for tb in (256, 128, 64, 32, 16):
        b_pad = _round_up(batch, tb)
        steps = b_pad // tb
        cost = b_pad + 8 * steps          # wasted rows + ~fixed per-grid-step cost
        if best is None or cost < best[0]:
            best = (cost, tb, b_pad)
    _, tb, b_pad = best
    # v7x has 2 TensorCores: make sure a lone tile is split so both get work.
    if b_pad // tb == 1 and tb >= 32:
        tb //= 2
    return tb, b_pad


def _choose_k_tile(hidden):
    """Stream W_dense over the reduction dim when it is large enough to matter."""
    for tk in (256, 512, 384, 128):
        if hidden % tk == 0 and hidden >= 2 * tk:
            return tk
    return hidden


def _choose_row_chunks(tb):
    """Row chunks in the epilogue so tanh/cast of chunk c+1 hides behind dot2 of c."""
    if tb >= 256:
        return 4
    if tb >= 64:
        return 2
    return 1


def _tpberta_head_kernel(hid_ref, x_ref, wd_ref, bd_ref, wo_ref, bo_ref,
                         out_ref, acc_ref, *, n_row_chunks):
    """One (batch-tile, K-tile) grid step of the selected task head.

    hid_ref : (1,) int32 SMEM (scalar prefetch; only the index_maps consume it)
    x_ref   : (TB, TK)    bf16  CLS activations tile (K slice)
    wd_ref  : (TK, H)     bf16  dense weight K-slice, (in, out) layout
    bd_ref  : (1, H)      f32   dense bias
    wo_ref  : (H, L_pad)  bf16  out_proj weight, (in, out) layout
    bo_ref  : (1, L_pad)  f32   out_proj bias
    out_ref : (TB, L_pad) f32
    acc_ref : (TB, H)     f32   scratch accumulator for the dense matmul
    """
    del hid_ref  # consumed by the index_maps only
    k = pl.program_id(1)

    @pl.when(k == 0)
    def _():
        acc_ref[...] = jnp.zeros_like(acc_ref)

    # Stream W_dense over K: bf16 MXU partial product, f32 accumulation in VMEM.
    acc_ref[...] += jnp.dot(x_ref[...], wd_ref[...],
                            preferred_element_type=jnp.float32)

    @pl.when(k == pl.num_programs(1) - 1)
    def _():
        bd = bd_ref[...]            # (1, H)      f32
        wo = wo_ref[...]            # (H, L_pad)  bf16
        bo = bo_ref[...]            # (1, L_pad)  f32
        tb = acc_ref.shape[0]
        chunk = tb // n_row_chunks
        # Static row chunks: the MXU push for chunk c overlaps tanh/cast of c+1.
        for c in range(n_row_chunks):
            r = c * chunk
            h = jnp.tanh(acc_ref[r:r + chunk, :] + bd)               # EUP/VPU, f32
            y = jnp.dot(h.astype(jnp.bfloat16), wo,
                        preferred_element_type=jnp.float32)          # MXU
            out_ref[r:r + chunk, :] = (y + bo).astype(out_ref.dtype)


@functools.partial(jax.jit, static_argnames=("tb",))
def _run_head(head_idx, x_cls, w_dense, b_dense, w_out, b_out, *, tb):
    """head_idx: (1,) int32; x_cls: (B_pad, H) bf16 with B_pad a multiple of tb.

    w_dense: (NH, H, H) bf16   b_dense: (NH, 1, H) f32
    w_out  : (NH, H, Lp) bf16  b_out  : (NH, 1, Lp) f32
    Returns (B_pad, Lp) f32.
    """
    b_pad, hidden = x_cls.shape
    _, _, l_pad = w_out.shape
    tk = _choose_k_tile(hidden)
    nk = hidden // tk
    nb = b_pad // tb
    n_row_chunks = _choose_row_chunks(tb)

    kernel = functools.partial(_tpberta_head_kernel, n_row_chunks=n_row_chunks)

    # Resident-set estimate (pipeline buffers + scratch) -> explicit VMEM limit.
    resident = (2 * tb * tk * 2              # x tile, bf16, double-buffered
                + 2 * tk * hidden * 2        # W_dense K-slice, bf16, double-buffered
                + hidden * 4                 # b_dense, single-buffered
                + hidden * l_pad * 2         # W_out, single-buffered
                + l_pad * 4                  # b_out, single-buffered
                + 2 * tb * l_pad * 4         # out tile, f32, double-buffered
                + tb * hidden * 4)           # f32 accumulator scratch
    vmem_limit = int(min(64 << 20, max(16 << 20, 2 * resident + (2 << 20))))

    cost = pl.CostEstimate(
        flops=2 * b_pad * hidden * (hidden + l_pad),
        transcendentals=b_pad * hidden,
        bytes_accessed=(x_cls.size * x_cls.dtype.itemsize
                        + hidden * hidden * 2
                        + hidden * 4
                        + hidden * l_pad * 2
                        + l_pad * 4
                        + b_pad * l_pad * 4),
    )

    return pl.pallas_call(
        kernel,
        out_shape=jax.ShapeDtypeStruct((b_pad, l_pad), jnp.float32),
        grid_spec=pltpu.PrefetchScalarGridSpec(
            num_scalar_prefetch=1,
            grid=(nb, nk),
            in_specs=[
                # activations: tiled over (batch, K)
                pl.BlockSpec((tb, tk), lambda i, k, hid: (i, k)),
                # dense weight: head selected via prefetched index, streamed over K
                pl.BlockSpec((None, tk, hidden),
                             lambda i, k, hid: (hid[0], k, 0)),
                # constant-index params: fetched once, single-buffered
                pl.BlockSpec((None, 1, hidden),
                             lambda i, k, hid: (hid[0], 0, 0),
                             pipeline_mode=pl.Buffered(1)),
                pl.BlockSpec((None, hidden, l_pad),
                             lambda i, k, hid: (hid[0], 0, 0),
                             pipeline_mode=pl.Buffered(1)),
                pl.BlockSpec((None, 1, l_pad),
                             lambda i, k, hid: (hid[0], 0, 0),
                             pipeline_mode=pl.Buffered(1)),
            ],
            out_specs=pl.BlockSpec((tb, l_pad), lambda i, k, hid: (i, 0)),
            scratch_shapes=[pltpu.VMEM((tb, hidden), jnp.float32)],
        ),
        compiler_params=pltpu.CompilerParams(
            dimension_semantics=("parallel", "arbitrary"),
            vmem_limit_bytes=vmem_limit),
        cost_estimate=cost,
    )(head_idx, x_cls, w_dense, b_dense, w_out, b_out)


class TPBertaMultiTaskHeadPallas:
    """Multi-task head: stacked (dense, out_proj) params for all task heads.

    forward(i, features) runs head i on features, matching the PyTorch module.
    """

    def __init__(self, hidden_size, num_classes, key):
        self.hidden_size = hidden_size
        self.num_classes = list(num_classes)
        self.num_heads = len(self.num_classes)
        self.l_pad = _round_up(max(self.num_classes), 128)

        h = hidden_size
        bound = 1.0 / math.sqrt(h)
        wd_list, bd_list, wo_list, bo_list = [], [], [], []
        for num_labels in self.num_classes:
            key, k1, k2, k3, k4 = jax.random.split(key, 5)
            wd = jax.random.uniform(k1, (h, h), jnp.float32, -bound, bound)
            bd = jax.random.uniform(k2, (1, h), jnp.float32, -bound, bound)
            wo = jax.random.uniform(k3, (h, num_labels), jnp.float32, -bound, bound)
            bo = jax.random.uniform(k4, (1, num_labels), jnp.float32, -bound, bound)
            wd_list.append(wd)
            bd_list.append(bd)
            wo_list.append(jnp.pad(wo, ((0, 0), (0, self.l_pad - num_labels))))
            bo_list.append(jnp.pad(bo, ((0, 0), (0, self.l_pad - num_labels))))

        # Stacked params: bf16 matmul weights, f32 biases.
        self.w_dense = jnp.stack(wd_list).astype(jnp.bfloat16)   # (NH, H, H)
        self.b_dense = jnp.stack(bd_list)                        # (NH, 1, H)
        self.w_out = jnp.stack(wo_list).astype(jnp.bfloat16)     # (NH, H, Lp)
        self.b_out = jnp.stack(bo_list)                          # (NH, 1, Lp)

    def __call__(self, i, features):
        batch = features.shape[0]
        # CLS-only slice + cast in the wrapper: kernel never sees the seq axis.
        x = features[:, 0, :].astype(jnp.bfloat16)               # (B, H)
        tb, b_pad = _choose_batch_tiling(batch)
        if b_pad != batch:
            x = jnp.pad(x, ((0, b_pad - batch), (0, 0)))
        head_idx = jnp.asarray([i], jnp.int32)
        out = _run_head(head_idx, x, self.w_dense, self.b_dense,
                        self.w_out, self.b_out, tb=tb)
        return out[:batch, : self.num_classes[i]]


def _reference(x_cls_f32, wd_bf16, bd_f32, wo_bf16, bo_f32, num_labels):
    """Pure-JAX reference replicating the kernel's mixed-precision math."""
    x = x_cls_f32.astype(jnp.bfloat16)
    h = jnp.tanh(jnp.dot(x, wd_bf16, preferred_element_type=jnp.float32) + bd_f32)
    y = jnp.dot(h.astype(jnp.bfloat16), wo_bf16,
                preferred_element_type=jnp.float32) + bo_f32
    return y[:, :num_labels]


if __name__ == "__main__":
    key = jax.random.PRNGKey(0)
    batch, seq, hidden = 2, 8, 32
    num_classes = [3, 5]  # two task-specific heads

    key, kp, kx = jax.random.split(key, 3)
    mtl_head = TPBertaMultiTaskHeadPallas(hidden, num_classes, kp)
    features = jax.random.normal(kx, (batch, seq, hidden), jnp.float32)

    ok = True
    for i in range(len(num_classes)):
        out = mtl_head(i, features)
        jax.block_until_ready(out)
        ref = _reference(features[:, 0, :],
                         mtl_head.w_dense[i], mtl_head.b_dense[i],
                         mtl_head.w_out[i], mtl_head.b_out[i],
                         num_classes[i])
        if out.shape != (batch, num_classes[i]):
            ok = False
        if not jnp.allclose(out, ref, atol=1e-3, rtol=1e-3):
            ok = False

    if ok:
        print("KERNEL_OK")
</pallas_src>

<mosaic_0001>
module attributes {stable_mosaic.version = 11 : i64} {
  func.func @_tpberta_head_kernel(%arg0: i32, %arg1: i32, %arg2: memref<1xi32, #tpu.memory_space<smem>>, %arg3: memref<16x32xbf16, #tpu.memory_space<vmem>>, %arg4: memref<1x32x32xbf16, #tpu.memory_space<vmem>>, %arg5: memref<1x1x32xf32, #tpu.memory_space<vmem>>, %arg6: memref<1x32x128xbf16, #tpu.memory_space<vmem>>, %arg7: memref<1x1x128xf32, #tpu.memory_space<vmem>>, %arg8: memref<16x128xf32, #tpu.memory_space<vmem>>, %arg9: memref<16x32xf32, #tpu.memory_space<vmem>>) attributes {dimension_semantics = [#tpu.dimension_semantics<parallel>, #tpu.dimension_semantics<arbitrary>], iteration_bounds = array<i64: 1, 1>, scalar_prefetch = 1 : i64, scratch_operands = 1 : i64, tpu.core_type = #tpu.core_type<tc>, window_params = [{transform_indices = @transform_0, window_bounds = array<i64: 16, 32>}, {transform_indices = @transform_1, window_bounds = array<i64: 1, 32, 32>}, {pipeline_mode = #tpu.pipeline_mode<synchronous>, transform_indices = @transform_2, window_bounds = array<i64: 1, 1, 32>}, {pipeline_mode = #tpu.pipeline_mode<synchronous>, transform_indices = @transform_3, window_bounds = array<i64: 1, 32, 128>}, {pipeline_mode = #tpu.pipeline_mode<synchronous>, transform_indices = @transform_4, window_bounds = array<i64: 1, 1, 128>}, {transform_indices = @transform_5, window_bounds = array<i64: 16, 128>}]} {
    %c0_i32 = arith.constant 0 : i32
    %0 = arith.cmpi eq, %arg1, %c0_i32 : i32
    %1 = arith.extui %0 : i1 to i32
    %c0_i32_0 = arith.constant 0 : i32
    %2 = arith.cmpi ne, %1, %c0_i32_0 : i32
    scf.if %2 {
      %cst_11 = arith.constant 0.000000e+00 : f32
      %13 = vector.broadcast %cst_11 : f32 to vector<16x32xf32>
      %c0_12 = arith.constant 0 : index
      %c0_13 = arith.constant 0 : index
      %14 = vector.load %arg9[%c0_12, %c0_13] : memref<16x32xf32, #tpu.memory_space<vmem>>, vector<16x32xf32>
      tpu.vector_store %arg9[%c0_12, %c0_13], %13 {strides = array<i32>} : memref<16x32xf32, #tpu.memory_space<vmem>>, vector<16x32xf32>,
    } else {
    }
    %c0 = arith.constant 0 : index
    %c0_1 = arith.constant 0 : index
    %3 = vector.load %arg9[%c0, %c0_1] : memref<16x32xf32, #tpu.memory_space<vmem>>, vector<16x32xf32>
    %c0_2 = arith.constant 0 : index
    %c0_3 = arith.constant 0 : index
    %4 = vector.load %arg3[%c0_2, %c0_3] : memref<16x32xbf16, #tpu.memory_space<vmem>>, vector<16x32xbf16>
    %c0_4 = arith.constant 0 : index
    %c0_5 = arith.constant 0 : index
    %c0_6 = arith.constant 0 : index
    %5 = vector.load %arg4[%c0_4, %c0_5, %c0_6] : memref<1x32x32xbf16, #tpu.memory_space<vmem>>, vector<1x32x32xbf16>
    %6 = vector.shape_cast %5 : vector<1x32x32xbf16> to vector<32x32xbf16>
    %cst = arith.constant dense<0.000000e+00> : vector<16x32xf32>
    %7 = tpu.matmul %4, %6, %cst {dimension_numbers = #tpu.dot_dimension_numbers<[1], [0], [0], [1], [0, 0, 1, 1], [], []>} : vector<16x32xbf16>, vector<32x32xbf16>, vector<16x32xf32> -> vector<16x32xf32>
    %8 = arith.addf %3, %7 : vector<16x32xf32>
    %c0_7 = arith.constant 0 : index
    %c0_8 = arith.constant 0 : index
    %9 = vector.load %arg9[%c0_7, %c0_8] : memref<16x32xf32, #tpu.memory_space<vmem>>, vector<16x32xf32>
    tpu.vector_store %arg9[%c0_7, %c0_8], %8 {strides = array<i32>} : memref<16x32xf32, #tpu.memory_space<vmem>>, vector<16x32xf32>,
    %c0_i32_9 = arith.constant 0 : i32
    %10 = arith.cmpi eq, %arg1, %c0_i32_9 : i32
    %11 = arith.extui %10 : i1 to i32
    %c0_i32_10 = arith.constant 0 : i32
    %12 = arith.cmpi ne, %11, %c0_i32_10 : i32
    scf.if %12 {
      %c0_11 = arith.constant 0 : index
      %c0_12 = arith.constant 0 : index
      %c0_13 = arith.constant 0 : index
      %13 = vector.load %arg5[%c0_11, %c0_12, %c0_13] : memref<1x1x32xf32, #tpu.memory_space<vmem>>, vector<1x1x32xf32>
      %14 = vector.shape_cast %13 : vector<1x1x32xf32> to vector<1x32xf32>
      %c0_14 = arith.constant 0 : index
      %c0_15 = arith.constant 0 : index
      %c0_16 = arith.constant 0 : index
      %15 = vector.load %arg6[%c0_14, %c0_15, %c0_16] : memref<1x32x128xbf16, #tpu.memory_space<vmem>>, vector<1x32x128xbf16>
      %16 = vector.shape_cast %15 : vector<1x32x128xbf16> to vector<32x128xbf16>
      %c0_17 = arith.constant 0 : index
      %c0_18 = arith.constant 0 : index
      %c0_19 = arith.constant 0 : index
      %17 = vector.load %arg7[%c0_17, %c0_18, %c0_19] : memref<1x1x128xf32, #tpu.memory_space<vmem>>, vector<1x1x128xf32>
      %18 = vector.shape_cast %17 : vector<1x1x128xf32> to vector<1x128xf32>
      %c0_20 = arith.constant 0 : index
      %c0_21 = arith.constant 0 : index
      %19 = vector.load %arg9[%c0_20, %c0_21] : memref<16x32xf32, #tpu.memory_space<vmem>>, vector<16x32xf32>
      %20 = vector.broadcast %14 : vector<1x32xf32> to vector<16x32xf32>
      %21 = arith.addf %19, %20 : vector<16x32xf32>
      %22 = math.tanh %21 : vector<16x32xf32>
      %23 = arith.truncf %22 : vector<16x32xf32> to vector<16x32xbf16>
      %cst_22 = arith.constant dense<0.000000e+00> : vector<16x128xf32>
      %24 = tpu.matmul %23, %16, %cst_22 {dimension_numbers = #tpu.dot_dimension_numbers<[1], [0], [0], [1], [0, 0, 1, 1], [], []>} : vector<16x32xbf16>, vector<32x128xbf16>, vector<16x128xf32> -> vector<16x128xf32>
      %25 = vector.broadcast %18 : vector<1x128xf32> to vector<16x128xf32>
      %26 = arith.addf %24, %25 : vector<16x128xf32>
      %c0_23 = arith.constant 0 : index
      %c0_24 = arith.constant 0 : index
      %27 = vector.load %arg8[%c0_23, %c0_24] : memref<16x128xf32, #tpu.memory_space<vmem>>, vector<16x128xf32>
      tpu.vector_store %arg8[%c0_23, %c0_24], %26 {strides = array<i32>} : memref<16x128xf32, #tpu.memory_space<vmem>>, vector<16x128xf32>,
    } else {
    }
    return
  }
  func.func @transform_0(%arg0: i32, %arg1: i32, %arg2: memref<1xi32, #tpu.memory_space<smem>>) -> (i32, i32) {
    %c0_i32 = arith.constant 0 : i32
    return %arg0, %arg1 : i32, i32
  }
  func.func @transform_1(%arg0: i32, %arg1: i32, %arg2: memref<1xi32, #tpu.memory_space<smem>>) -> (i32, i32, i32) {
    %c0 = arith.constant 0 : index
    %0 = memref.load %arg2[%c0] : memref<1xi32, #tpu.memory_space<smem>>
    %c0_i32 = arith.constant 0 : i32
    %c0_i32_0 = arith.constant 0 : i32
    return %0, %arg1, %c0_i32 : i32, i32, i32
  }
  func.func @transform_2(%arg0: i32, %arg1: i32, %arg2: memref<1xi32, #tpu.memory_space<smem>>) -> (i32, i32, i32) {
    %c0 = arith.constant 0 : index
    %0 = memref.load %arg2[%c0] : memref<1xi32, #tpu.memory_space<smem>>
    %c0_i32 = arith.constant 0 : i32
    %c0_i32_0 = arith.constant 0 : i32
    %c0_i32_1 = arith.constant 0 : i32
    return %0, %c0_i32, %c0_i32_0 : i32, i32, i32
  }
  func.func @transform_3(%arg0: i32, %arg1: i32, %arg2: memref<1xi32, #tpu.memory_space<smem>>) -> (i32, i32, i32) {
    %c0 = arith.constant 0 : index
    %0 = memref.load %arg2[%c0] : memref<1xi32, #tpu.memory_space<smem>>
    %c0_i32 = arith.constant 0 : i32
    %c0_i32_0 = arith.constant 0 : i32
    %c0_i32_1 = arith.constant 0 : i32
    return %0, %c0_i32, %c0_i32_0 : i32, i32, i32
  }
  func.func @transform_4(%arg0: i32, %arg1: i32, %arg2: memref<1xi32, #tpu.memory_space<smem>>) -> (i32, i32, i32) {
    %c0 = arith.constant 0 : index
    %0 = memref.load %arg2[%c0] : memref<1xi32, #tpu.memory_space<smem>>
    %c0_i32 = arith.constant 0 : i32
    %c0_i32_0 = arith.constant 0 : i32
    %c0_i32_1 = arith.constant 0 : i32
    return %0, %c0_i32, %c0_i32_0 : i32, i32, i32
  }
  func.func @transform_5(%arg0: i32, %arg1: i32, %arg2: memref<1xi32, #tpu.memory_space<smem>>) -> (i32, i32) {
    %c0_i32 = arith.constant 0 : i32
    %c0_i32_0 = arith.constant 0 : i32
    return %arg0, %c0_i32 : i32, i32
  }
}

</mosaic_0001>

<bundles_post_ra>
// kernel: _run_head.1
= control target key start
LH: loop header
LB: loop body
LE: loop exit
PB: predicated region body
PF: predicated region fallthrough
CT: control target
= control target key end

     0   :  { %12 = vsyncpa [#allocation6], 0  ;;  %s583_s0 = inlined_call_operand.<no memory space> [shape: s32[1], index: 0, kind: input, shape index: {}]   ;;  %s584_s1 = inlined_call_operand.hbm [shape: bf16[16,32], index: 1, kind: input, shape index: {}]   ;;  %s585_s2 = inlined_call_operand.hbm [shape: bf16[2,32,32], index: 2, kind: input, shape index: {}]   ;;  %s586_s3 = inlined_call_operand.vmem [shape: f32[2,1,32], index: 3, kind: input, shape index: {}]   ;;  %s587_s4 = inlined_call_operand.hbm [shape: bf16[2,32,128], index: 4, kind: input, shape index: {}]   ;;  %s588_s5 = inlined_call_operand.vmem [shape: f32[2,1,128], index: 5, kind: input, shape index: {}]   ;;  %s589_s6 = inlined_call_operand.hbm [shape: f32[16,128], index: 6, kind: output, shape index: {}]  }
   0x1   :  { %13 = vsyncpa [#allocation9], 0 }
   0x2   :  { %14 = vsyncpa [#allocation7], 0  ;;  %s311_s23 = sshll.u32 %s583_s0, 8  ;;  %s452_s27 = smov [#allocation8]  }
   0x3   :  { %s35_s26 = scalar_lea.hbm %s585_s2, %s311_s23  ;;  %s36_s28 = sshll.u32 %s452_s27, 4  ;;  %s37_s28 = int_to_ptr.vmem [resolvable:$true] %s36_s28 }
   0x4   :  { %s506_s7 = scalar_lea.hbm %s587_s4, %s311_s23  ;;  %s354_s8 = scalar_lea.hbm %s35_s26, 256 }
   0x5   :  { %p355_p0 = scmp.ne.s32.totalorder %s35_s26, %s354_s8  ;;  %s356_s11 = scalar_lea.hbm %s585_s2, 512 }
   0x6   :  { %p357_p1 = scmp.lt.u32.totalorder %s35_s26, %s585_s2  ;;  %p358_p2 = scmp.lt.u32.totalorder %s356_s11, %s354_s8 }
   0x7   :  { %p360_p4 = scmp.lt.u32.totalorder %s354_s8, %s35_s26 }
   0x8   :  { %p359_p3 = por %p358_p2, %p357_p1 }
   0xa   :  { %p361_p5 = por %p360_p4, %p359_p3 }
   0xc   :  { %p362_p6 = pnand %p361_p5, %p355_p0 }
   0xe   :  { %365 = shalt.err (!%p362_p6)
}
   0xf   :  { %s366_s14 = scalar_lea.vmem %s37_s28, 256  ;;  %p371_p8 = scmp.lt.s32.totalorder %s37_s28, %s37_s28 }
  0x10   :  { %p367_p7 = scmp.ne.s32.totalorder %s37_s28, %s366_s14  ;;  %p372_p9 = scmp.lt.s32.totalorder %s366_s14, %s366_s14 }
  0x12   :  { %p373_p10 = por %p372_p9, %p371_p8 }
  0x14   :  { %p374_p11 = pnand %p373_p10, %p367_p7 }
  0x16   :  { %377 = shalt.err (!%p374_p11)
}
  0x17   :  { %s453_s15 = smov 64   ;;  %s454_s16 = smov 4  }
  0x18   :  { %42 = dma.hbm_to_vmem [thread:$0]  %s35_s26, 256, %s37_s28, [#allocation9], %s453_s15, %s453_s15, %s454_s16  }
  0x19   :  { %s455_s2 = smov [#allocation5]   ;;  %s456_s18 = smov [#allocation10]  }
  0x1a   :  { %s20_s17 = sshll.u32 %s455_s2, 4  ;;  %s59_s19 = sshll.u32 %s456_s18, 4  ;;  %s21_s17 = int_to_ptr.vmem [resolvable:$true] %s20_s17  ;;  %s517_s19 = int_to_ptr.vmem [resolvable:$true] %s59_s19 }
  0x1b   :  { %s378_s22 = scalar_lea.hbm %s584_s1, 128 }
  0x1c   :  { %p379_p12 = scmp.ne.s32.totalorder %s584_s1, %s378_s22  ;;  %p382_p13 = scmp.lt.u32.totalorder %s378_s22, %s584_s1 }
  0x1e   :  { %p384_p0 = pnand %p382_p13, %p379_p12 }
  0x20   :  { %387 = shalt.err (!%p384_p0)
}
  0x21   :  { %s388_s26 = scalar_lea.vmem %s21_s17, 128  ;;  %p393_p2 = scmp.lt.s32.totalorder %s21_s17, %s21_s17 }
  0x22   :  { %p389_p1 = scmp.ne.s32.totalorder %s21_s17, %s388_s26  ;;  %p394_p3 = scmp.lt.s32.totalorder %s388_s26, %s388_s26 }
  0x24   :  { %p395_p4 = por %p394_p3, %p393_p2 }
  0x26   :  { %p396_p5 = pnand %p395_p4, %p389_p1 }
  0x28   :  { %399 = shalt.err (!%p396_p5)
}
  0x29   :  { %26 = dma.hbm_to_vmem [thread:$0]  %s584_s1, 128, %s21_s17, [#allocation6], %s453_s15, %s453_s15, %s454_s16  }
  0x2a   :  { %s400_s30 = scalar_lea.hbm %s506_s7, 256  ;;  %s402_s10 = scalar_lea.hbm %s587_s4, 512 }
  0x2b   :  { %p401_p6 = scmp.ne.s32.totalorder %s506_s7, %s400_s30  ;;  %p403_p7 = scmp.lt.u32.totalorder %s506_s7, %s587_s4 }
  0x2c   :  { %p404_p8 = scmp.lt.u32.totalorder %s402_s10, %s400_s30  ;;  %p406_p10 = scmp.lt.u32.totalorder %s400_s30, %s506_s7 }
  0x2e   :  { %p405_p9 = por %p404_p8, %p403_p7 }
  0x30   :  { %p407_p11 = por %p406_p10, %p405_p9 }
  0x32   :  { %p408_p12 = pnand %p407_p11, %p401_p6 }
  0x34   :  { %411 = shalt.err (!%p408_p12)
}
  0x35   :  { %s412_s1 = scalar_lea.vmem %s517_s19, 256  ;;  %p417_p0 = scmp.lt.s32.totalorder %s517_s19, %s517_s19 }
  0x36   :  { %p413_p13 = scmp.ne.s32.totalorder %s517_s19, %s412_s1  ;;  %p418_p1 = scmp.lt.s32.totalorder %s412_s1, %s412_s1 }
  0x38   :  { %p419_p2 = por %p418_p1, %p417_p0 }
  0x3a   :  { %p420_p3 = pnand %p419_p2, %p413_p13 }
  0x3c   :  { %423 = shalt.err (!%p420_p3)
}
  0x3d   :  { %65 = dma.hbm_to_vmem [thread:$0]  %s506_s7, 256, %s517_s19, [#allocation9], %s453_s15, %s453_s15, %s454_s16  }
  0x3e   :  { %446 = dma.done.wait [#allocation6], 128  }
  0x3f   :  { %447 = vsyncadd [#allocation6], 4294967168 }
  0x40   :  { %448 = dma.done.wait [#allocation9], 512  }
  0x41   :  { %449 = vsyncadd [#allocation9], 4294966784  ;;  %vm107_vm0 = vcmask 261120   ;;  %v457_v0 = vmov 0.0   ;;  %vm458_vm1 = vmmov 0   ;;  %v345_v1 = vld [vmem:[#allocation8] sm:$0xff]  }
  0x42   :  { %319 = vmatprep.subr.bf16.mxu0 %v457_v0  ;;  %323 = vmatprep.mubr.msk.bf16.mxu0 %vm458_vm1, %v457_v0  ;;  %108 = vst.msk [vmem:[#allocation2] sm:$0xff] %vm107_vm0, %v457_v0  ;;  %109 = vst.msk [vmem:[#allocation2 + $0x8] sm:$0xff] %vm107_vm0, %v457_v0  ;;  %v346_v2 = vld [vmem:[#allocation8 + $0x8] sm:$0xff]   ;;  %v347_v3 = vld [vmem:[#allocation5] sm:$0xff]   ;;  %p92_p4 = scmp.lt.s32.totalorder %s583_s0, 1  ;;  %s459_s20 = smov [#allocation11]  }
  0x43   :  { %327 = vmatprep.subr.bf16.mxu1 %v457_v0  ;;  %331 = vmatprep.mubr.msk.bf16.mxu1 %vm458_vm1, %v457_v0  ;;  %v348_v4 = vld [vmem:[#allocation10] sm:$0xff]   ;;  %v349_v5 = vld [vmem:[#allocation10 + $0x8] sm:$0xff]   ;;  %s275_s21 = sshll.u32 %s459_s20, 4  ;;  %s276_s21 = int_to_ptr.vmem [resolvable:$true] %s275_s21 }
  0x44   :  { %320 = vmatpush3.bf16.msra.mxu0 %v345_v1  ;;  %328 = vmatpush3.bf16.msra.mxu1 %v348_v4  ;;  %s591_s0 = smov (!%p92_p4, %s583_s0), 1  ;;  %p429_p6 = scmp.lt.s32.totalorder %s276_s21, %s276_s21 }
  0x45   :  { %321 = vmatprep.subr.bf16.mxu0 %v457_v0  ;;  %329 = vmatprep.subr.bf16.mxu1 %v457_v0  ;;  %s94_s2 = scalar_lea.vmem %s586_s3, %s591_s0  ;;  %s100_s19 = scalar_lea.vmem %s588_s5, %s591_s0 }
  0x46   :  { %v306_v14 = vld [vmem:[%s94_s2] ss:$0 sm:$0xff]  ;;  %s424_s3 = scalar_lea.vmem %s276_s21, 256 }
  0x47   :  { %v307_v22 = vld [vmem:[%s100_s19] ss:$0 sm:$0xff]  ;;  %p425_p5 = scmp.ne.s32.totalorder %s276_s21, %s424_s3  ;;  %p430_p7 = scmp.lt.s32.totalorder %s424_s3, %s424_s3 }
  0x48   :  { %322 = vmatpush3.bf16.msra.mxu0 %v346_v2  ;;  %330 = vmatpush3.bf16.msra.mxu1 %v349_v5 }
  0x49   :  { %v110_v6 = vld [vmem:[#allocation2] sm:$0xff]  ;;  %v111_v8 = vld [vmem:[#allocation2 + $0x8] sm:$0xff]  ;;  %p431_p8 = por %p430_p7, %p429_p6 }
  0x4b   :  { %324 = vmatmul.mubr.msk.bf16.vlgmr.msra.gmra.mrb[0].mxu0 %vm107_vm0, %v347_v3  ;;  %p432_p9 = pnand %p431_p8, %p425_p5 }
 0x11e   :  { %v173_v7 = vpop.f32.mrb[0].mxu0 }
 0x11f   :  { %v180_v9 = vadd.f32 %v173_v7, %v110_v6  ;;  %v325_v10 = vpop.f32.mrb[1].mxu0 }
 0x120   :  { %v176_v11 = vpop.f32.mrb[2].mxu0 }
 0x121   :  { %182 = vst.msk [vmem:[#allocation2] sm:$0xff] %vm107_vm0, %v180_v9  ;;  %v181_v12 = vadd.f32 %v176_v11, %v111_v8  ;;  %v326_v13 = vpop.f32.mrb[3].mxu0 }
 0x123   :  { %183 = vst.msk [vmem:[#allocation2 + $0x8] sm:$0xff] %vm107_vm0, %v181_v12 }
 0x128   :  { %v193_v15 = vld [vmem:[#allocation2] sm:$0xff] }
 0x129   :  { %v201_v16 = vadd.f32 %v306_v14, %v193_v15 }
 0x12a   :  { %v194_v17 = vld [vmem:[#allocation2 + $0x8] sm:$0xff] }
 0x12b   :  { %v202_v18 = vadd.f32 %v306_v14, %v194_v17  ;;  %350 = vtanh.f32 %v201_v16 }
 0x12d   :  { %352 = vtanh.f32 %v202_v18 }
 0x135   :  { %v351_v19 = vpop.eup %350 }
 0x137   :  { %v353_v20 = vpop.eup %352 }
 0x138   :  { %v205_v21 = vpack.c.bf16 %v353_v20, %v351_v19 }
 0x13a   :  { %332 = vmatmul.mubr.msk.bf16.vlgmr.msra.gmra.mrb[0].mxu1 %vm107_vm0, %v205_v21 }
 0x20d   :  { %v261_v23 = vpop.f32.mrb[0].mxu1 }
 0x20e   :  { %v262_v24 = vadd.f32 %v307_v22, %v261_v23  ;;  %v333_v25 = vpop.f32.mrb[1].mxu1 }
 0x20f   :  { %v264_v26 = vpop.f32.mrb[2].mxu1 }
 0x210   :  { %268 = vst [vmem:[#allocation11] sm:$0xff] %v262_v24  ;;  %v265_v27 = vadd.f32 %v307_v22, %v264_v26  ;;  %v334_v28 = vpop.f32.mrb[3].mxu1 }
 0x212   :  { %269 = vst [vmem:[#allocation11 + $0x8] sm:$0xff] %v265_v27 }
 0x213   :  { %435 = shalt.err (!%p432_p9)
}
 0x214   :  { %s436_s22 = scalar_lea.hbm %s589_s6, 256 }
 0x215   :  { %p437_p10 = scmp.ne.s32.totalorder %s589_s6, %s436_s22  ;;  %p440_p11 = scmp.lt.u32.totalorder %s436_s22, %s589_s6 }
 0x217   :  { %p442_p12 = pnand %p440_p11, %p437_p10 }
 0x219   :  { %445 = shalt.err (!%p442_p12)
}
 0x21a   :  { %s460_s26 = smov 128   ;;  %s461_s28 = smov 8  }
 0x21b   :  { %281 = dma.vmem_to_hbm [thread:$0]  %s276_s21, 256, %s589_s6, [#allocation7], %s460_s26, %s460_s26, %s461_s28  }
 0x21c   :  { %450 = dma.done.wait [#allocation7], 256  }
 0x21d   :  { %451 = vsyncadd [#allocation7], 4294967040 }
 0x21e   :  { %285 = vsyncpa [#allocation6], 1 }
 0x21f   :  { %286 = vsyncpa [#allocation9], 1 }
 0x220   :  { %287 = vsyncpa [#allocation7], 1 }

</bundles_post_ra>
